<compile_context>
chip_gen: v7x
topology: tpu7x:2x2x1
jax: 0.10.0
libtpu: 0.0.40
codegen_flags: <defaults>
</compile_context>

<pallas_src>
import functools

import jax
import jax.numpy as jnp
from jax import lax
from jax.experimental import pallas as pl
from jax.experimental.pallas import tpu as pltpu


def _round_up(v: int, m: int) -> int:
    return ((v + m - 1) // m) * m


# ----------------------------- fused Pallas kernel ---------------------------
def _gnn_fused_kernel(adj_ref, x_ref, *args, num_layers: int):
    """args = (w0, b0, w1, b1, ..., w_{L-1}, b_{L-1}, o_ref).

    adj_ref: [1, N, N]   (bf16, exact for {0,1})
    x_ref:   [1, N, F_in] (f32)
    w_i:     [F_i, O_pad] (bf16, zero-padded to a lane-dense width)
    b_i:     [1, O_pad]   (f32, zero-padded)
    o_ref:   [1, N, O_pad]
    """
    o_ref = args[2 * num_layers]

    # Degree normalization, once per graph. adj values are exact in bf16 ({0,1}),
    # the row-sum / rsqrt happen in f32.
    adj = adj_ref[0].astype(jnp.float32)               # [N, N]
    deg = jnp.sum(adj, axis=-1, keepdims=True)         # [N, 1]  XLU row-reduce
    dinv = lax.rsqrt(deg + 1e-6)                       # [N, 1]  single EUP rsqrt

    # Row-normalized adjacency as the bf16 MXU operand, built ONCE per graph.
    #   D^-1/2 A D^-1/2 @ h  ==  (dinv * A) @ (dinv * h)     (no transpose needed)
    adj_n = (dinv * adj).astype(jnp.bfloat16)           # [N, N] bf16

    h = x_ref[0].astype(jnp.float32)                     # activations carried in f32
    for i in range(num_layers):
        w = args[2 * i][...]                             # [F_i, O_pad] bf16
        b = args[2 * i + 1][...]                         # [1,  O_pad] f32
        # Matmul-order choice in MXU-tile units (128-wide column tiles).
        in_tiles = pl.cdiv(w.shape[0], 128)
        out_tiles = pl.cdiv(w.shape[1], 128)
        if in_tiles <= out_tiles:
            # aggregate first: ((dinv*A) @ (dinv*h)) @ W   (smaller N^2 term)
            hh = (dinv * h).astype(jnp.bfloat16)
            agg = jnp.dot(adj_n, hh, preferred_element_type=jnp.float32)
            z = jnp.dot(agg.astype(jnp.bfloat16), w,
                        preferred_element_type=jnp.float32)
        else:
            # project first: (dinv*A) @ (dinv * (h @ W))
            hw = jnp.dot(h.astype(jnp.bfloat16), w,
                         preferred_element_type=jnp.float32)
            z = jnp.dot(adj_n, (dinv * hw).astype(jnp.bfloat16),
                        preferred_element_type=jnp.float32)
        z = z + b                                         # bias broadcast [1, O_pad]
        if i < num_layers - 1:                            # ReLU on hidden layers only
            z = jnp.maximum(z, 0.0)
        h = z
    o_ref[0] = h.astype(o_ref.dtype)                      # lane-dense [N, O_pad] store


# ----------------------------- wrapper ---------------------------------------
def gnn_forward(x, adj, params, *, adj_compute_dtype=jnp.bfloat16):
    """Fused GNN forward. x: [B,N,F_in], adj: [B,N,N], params: [(w_i, b_i)] -> [B,N,O].

    Matches GNN(batch_norm=False, residual=False, skip_concat=False,
    activation=ReLU on hidden layers, no activation on the last layer).
    NOTE: adj_compute_dtype=bfloat16 is exact only for {0,1} adjacency; pass
    jnp.float32 for weighted adjacency.
    """
    B, N, F_in = x.shape
    L = len(params)
    O = params[-1][0].shape[1]
    Op = _round_up(O, 128)                                 # lane-dense padded width

    # One graph per grid step: minimal live set, natural megacore sharding on v7x.
    grid = (B,)

    in_specs = [
        pl.BlockSpec((1, N, N), lambda g: (g, 0, 0)),      # adj (per-graph slice)
        pl.BlockSpec((1, N, F_in), lambda g: (g, 0, 0)),   # x   (per-graph slice)
    ]

    # Zero-pad weights / biases to the lane-dense padded width; weights go to bf16
    # (MXU operand dtype), biases stay f32 (added to the f32 accumulator). Padded
    # rows of layer i>0 weights hit exactly-zero padded activation columns.
    wb_inputs = []
    w_bytes = 0
    for i, (w, b) in enumerate(params):
        fi, fo = w.shape
        assert fi == (F_in if i == 0 else O) and fo == O
        rows = F_in if i == 0 else Op
        wp = jnp.zeros((rows, Op), jnp.float32).at[:fi, :fo].set(w.astype(jnp.float32))
        bp = jnp.zeros((1, Op), jnp.float32).at[0, :fo].set(b.astype(jnp.float32))
        wb_inputs += [wp.astype(jnp.bfloat16), bp]
        w_bytes += rows * Op * 2 + Op * 4
        in_specs += [
            pl.BlockSpec((rows, Op), lambda g: (0, 0)),    # weight (shared, resident)
            pl.BlockSpec((1, Op), lambda g: (0, 0)),       # bias   (shared, resident)
        ]

    adj_in = adj.astype(adj_compute_dtype)

    # ---- VMEM budget: double-buffered per-graph blocks + resident weights + scratch.
    adj_blk = N * N * jnp.dtype(adj_compute_dtype).itemsize
    x_blk = N * F_in * 4
    out_blk = N * Op * 4
    act_scratch = 4 * N * max(F_in, Op) * 4                # rough in-body live values
    need = 2 * (adj_blk + x_blk + out_blk) + w_bytes + act_scratch
    try:
        phys_vmem = pltpu.get_tpu_info().vmem_capacity_bytes   # 64 MiB on v7x, 128 on v5e/v6e
    except Exception:
        phys_vmem = 64 << 20
    vmem_limit = int(min(max(32 << 20, 2 * need), int(phys_vmem * 0.85)))

    # ---- Cost hint for XLA scheduling around the custom call.
    flops = 0
    fi = F_in
    for _ in range(L):
        flops += 2 * B * (N * N * min(fi, Op) + N * fi * Op)
        fi = Op
    bytes_accessed = (B * N * N * jnp.dtype(adj_compute_dtype).itemsize
                      + B * N * F_in * 4 + B * N * Op * 4 + w_bytes)
    cost = pl.CostEstimate(flops=flops, transcendentals=B * N,
                           bytes_accessed=bytes_accessed)

    kernel = functools.partial(_gnn_fused_kernel, num_layers=L)
    out_padded = pl.pallas_call(
        kernel,
        out_shape=jax.ShapeDtypeStruct((B, N, Op), x.dtype),
        grid=grid,
        in_specs=in_specs,
        out_specs=pl.BlockSpec((1, N, Op), lambda g: (g, 0, 0)),
        compiler_params=pltpu.CompilerParams(
            dimension_semantics=("parallel",),
            vmem_limit_bytes=vmem_limit),
        cost_estimate=cost,
    )(adj_in, x, *wb_inputs)

    return out_padded[..., :O]


# ----------------------------- parameter init --------------------------------
def init_gnn_params(key, in_features, out_features, num_layers):
    """Matches GCN.reset_parameters: xavier_uniform weight, zero bias."""
    params = []
    fin = in_features
    for _ in range(num_layers):
        key, sub = jax.random.split(key)
        bound = (6.0 / (fin + out_features)) ** 0.5
        w = jax.random.uniform(sub, (fin, out_features), jnp.float32, -bound, bound)
        b = jnp.zeros((out_features,), jnp.float32)
        params.append((w, b))
        fin = out_features
    return params


# ----------------------------- pure-JAX reference ----------------------------
def _gcn_ref(x, adj, w, b, relu):
    deg = jnp.sum(adj, axis=-1)
    dinv = jnp.power(deg + 1e-6, -0.5)
    d = jax.vmap(jnp.diag)(dinv)
    adj_norm = jnp.matmul(jnp.matmul(d, adj), d)
    z = jnp.matmul(jnp.matmul(adj_norm, x), w) + b
    return jnp.maximum(z, 0.0) if relu else z


def gnn_ref(x, adj, params):
    n = len(params)
    for i, (w, b) in enumerate(params):
        x = _gcn_ref(x, adj, w, b, i < n - 1)
    return x


# ----------------------------- main -------------------------------------------
if __name__ == "__main__":
    B, N, F_IN, F_OUT, LAYERS = 2, 16, 8, 32, 3

    key = jax.random.PRNGKey(0)
    kx, ka, kp = jax.random.split(key, 3)

    x = jax.random.normal(kx, (B, N, F_IN), jnp.float32)
    # Synthetic symmetric {0,1} adjacency.
    adj_raw = (jax.random.uniform(ka, (B, N, N)) < 0.4).astype(jnp.float32)
    adj = jnp.maximum(adj_raw, jnp.swapaxes(adj_raw, -1, -2))

    params = init_gnn_params(kp, F_IN, F_OUT, LAYERS)

    out = jax.block_until_ready(gnn_forward(x, adj, params))
    ref = jax.block_until_ready(gnn_ref(x, adj, params))

    assert out.shape == (B, N, F_OUT), out.shape
    err = float(jnp.max(jnp.abs(out - ref)))
    # bf16 MXU operands (f32 accumulation) -> tolerance loosened per review.
    assert jnp.allclose(out, ref, atol=5e-2, rtol=5e-2), err
    print("KERNEL_OK")
</pallas_src>

<mosaic_0001>
module attributes {stable_mosaic.version = 11 : i64} {
  func.func @_gnn_fused_kernel(%arg0: i32, %arg1: memref<1x16x16xbf16, #tpu.memory_space<vmem>>, %arg2: memref<1x16x8xf32, #tpu.memory_space<vmem>>, %arg3: memref<8x128xbf16, #tpu.memory_space<vmem>>, %arg4: memref<1x128xf32, #tpu.memory_space<vmem>>, %arg5: memref<128x128xbf16, #tpu.memory_space<vmem>>, %arg6: memref<1x128xf32, #tpu.memory_space<vmem>>, %arg7: memref<128x128xbf16, #tpu.memory_space<vmem>>, %arg8: memref<1x128xf32, #tpu.memory_space<vmem>>, %arg9: memref<1x16x128xf32, #tpu.memory_space<vmem>>) attributes {dimension_semantics = [#tpu.dimension_semantics<parallel>], iteration_bounds = array<i64: 2>, scalar_prefetch = 0 : i64, scratch_operands = 0 : i64, tpu.core_type = #tpu.core_type<tc>, window_params = [{transform_indices = @transform_0, window_bounds = array<i64: 1, 16, 16>}, {transform_indices = @transform_1, window_bounds = array<i64: 1, 16, 8>}, {pipeline_mode = #tpu.pipeline_mode<synchronous>, transform_indices = @transform_2, window_bounds = array<i64: 8, 128>}, {pipeline_mode = #tpu.pipeline_mode<synchronous>, transform_indices = @transform_3, window_bounds = array<i64: 1, 128>}, {pipeline_mode = #tpu.pipeline_mode<synchronous>, transform_indices = @transform_4, window_bounds = array<i64: 128, 128>}, {pipeline_mode = #tpu.pipeline_mode<synchronous>, transform_indices = @transform_5, window_bounds = array<i64: 1, 128>}, {pipeline_mode = #tpu.pipeline_mode<synchronous>, transform_indices = @transform_6, window_bounds = array<i64: 128, 128>}, {pipeline_mode = #tpu.pipeline_mode<synchronous>, transform_indices = @transform_7, window_bounds = array<i64: 1, 128>}, {transform_indices = @transform_8, window_bounds = array<i64: 1, 16, 128>}]} {
    %c0 = arith.constant 0 : index
    %c0_0 = arith.constant 0 : index
    %c0_1 = arith.constant 0 : index
    %0 = vector.load %arg1[%c0, %c0_0, %c0_1] : memref<1x16x16xbf16, #tpu.memory_space<vmem>>, vector<1x16x16xbf16>
    %1 = vector.shape_cast %0 : vector<1x16x16xbf16> to vector<16x16xbf16>
    %2 = arith.extf %1 : vector<16x16xbf16> to vector<16x16xf32>
    %cst = arith.constant dense<0.000000e+00> : vector<16xf32>
    %3 = vector.multi_reduction <add>, %2, %cst [1] : vector<16x16xf32> to vector<16xf32>
    %4 = vector.shape_cast %3 : vector<16xf32> to vector<16x1xf32>
    %cst_2 = arith.constant 9.99999997E-7 : f32
    %5 = vector.broadcast %cst_2 : f32 to vector<16x1xf32>
    %6 = arith.addf %4, %5 : vector<16x1xf32>
    %7 = math.rsqrt %6 : vector<16x1xf32>
    %8 = vector.broadcast %7 : vector<16x1xf32> to vector<16x16xf32>
    %9 = arith.mulf %8, %2 : vector<16x16xf32>
    %10 = arith.truncf %9 : vector<16x16xf32> to vector<16x16xbf16>
    %c0_3 = arith.constant 0 : index
    %c0_4 = arith.constant 0 : index
    %c0_5 = arith.constant 0 : index
    %11 = vector.load %arg2[%c0_3, %c0_4, %c0_5] : memref<1x16x8xf32, #tpu.memory_space<vmem>>, vector<1x16x8xf32>
    %12 = vector.shape_cast %11 : vector<1x16x8xf32> to vector<16x8xf32>
    %c0_6 = arith.constant 0 : index
    %c0_7 = arith.constant 0 : index
    %13 = vector.load %arg3[%c0_6, %c0_7] : memref<8x128xbf16, #tpu.memory_space<vmem>>, vector<8x128xbf16>
    %c0_8 = arith.constant 0 : index
    %c0_9 = arith.constant 0 : index
    %14 = vector.load %arg4[%c0_8, %c0_9] : memref<1x128xf32, #tpu.memory_space<vmem>>, vector<1x128xf32>
    %15 = vector.broadcast %7 : vector<16x1xf32> to vector<16x8xf32>
    %16 = arith.mulf %15, %12 : vector<16x8xf32>
    %17 = arith.truncf %16 : vector<16x8xf32> to vector<16x8xbf16>
    %cst_10 = arith.constant dense<0.000000e+00> : vector<16x8xf32>
    %18 = tpu.matmul %10, %17, %cst_10 {dimension_numbers = #tpu.dot_dimension_numbers<[1], [0], [0], [1], [0, 0, 1, 1], [], []>} : vector<16x16xbf16>, vector<16x8xbf16>, vector<16x8xf32> -> vector<16x8xf32>
    %19 = arith.truncf %18 : vector<16x8xf32> to vector<16x8xbf16>
    %cst_11 = arith.constant dense<0.000000e+00> : vector<16x128xf32>
    %20 = tpu.matmul %19, %13, %cst_11 {dimension_numbers = #tpu.dot_dimension_numbers<[1], [0], [0], [1], [0, 0, 1, 1], [], []>} : vector<16x8xbf16>, vector<8x128xbf16>, vector<16x128xf32> -> vector<16x128xf32>
    %21 = vector.broadcast %14 : vector<1x128xf32> to vector<16x128xf32>
    %22 = arith.addf %20, %21 : vector<16x128xf32>
    %cst_12 = arith.constant 0.000000e+00 : f32
    %23 = vector.broadcast %cst_12 : f32 to vector<16x128xf32>
    %24 = arith.maximumf %22, %23 : vector<16x128xf32>
    %c0_13 = arith.constant 0 : index
    %c0_14 = arith.constant 0 : index
    %25 = vector.load %arg5[%c0_13, %c0_14] : memref<128x128xbf16, #tpu.memory_space<vmem>>, vector<128x128xbf16>
    %c0_15 = arith.constant 0 : index
    %c0_16 = arith.constant 0 : index
    %26 = vector.load %arg6[%c0_15, %c0_16] : memref<1x128xf32, #tpu.memory_space<vmem>>, vector<1x128xf32>
    %27 = vector.broadcast %7 : vector<16x1xf32> to vector<16x128xf32>
    %28 = arith.mulf %27, %24 : vector<16x128xf32>
    %29 = arith.truncf %28 : vector<16x128xf32> to vector<16x128xbf16>
    %cst_17 = arith.constant dense<0.000000e+00> : vector<16x128xf32>
    %30 = tpu.matmul %10, %29, %cst_17 {dimension_numbers = #tpu.dot_dimension_numbers<[1], [0], [0], [1], [0, 0, 1, 1], [], []>} : vector<16x16xbf16>, vector<16x128xbf16>, vector<16x128xf32> -> vector<16x128xf32>
    %31 = arith.truncf %30 : vector<16x128xf32> to vector<16x128xbf16>
    %cst_18 = arith.constant dense<0.000000e+00> : vector<16x128xf32>
    %32 = tpu.matmul %31, %25, %cst_18 {dimension_numbers = #tpu.dot_dimension_numbers<[1], [0], [0], [1], [0, 0, 1, 1], [], []>} : vector<16x128xbf16>, vector<128x128xbf16>, vector<16x128xf32> -> vector<16x128xf32>
    %33 = vector.broadcast %26 : vector<1x128xf32> to vector<16x128xf32>
    %34 = arith.addf %32, %33 : vector<16x128xf32>
    %cst_19 = arith.constant 0.000000e+00 : f32
    %35 = vector.broadcast %cst_19 : f32 to vector<16x128xf32>
    %36 = arith.maximumf %34, %35 : vector<16x128xf32>
    %c0_20 = arith.constant 0 : index
    %c0_21 = arith.constant 0 : index
    %37 = vector.load %arg7[%c0_20, %c0_21] : memref<128x128xbf16, #tpu.memory_space<vmem>>, vector<128x128xbf16>
    %c0_22 = arith.constant 0 : index
    %c0_23 = arith.constant 0 : index
    %38 = vector.load %arg8[%c0_22, %c0_23] : memref<1x128xf32, #tpu.memory_space<vmem>>, vector<1x128xf32>
    %39 = vector.broadcast %7 : vector<16x1xf32> to vector<16x128xf32>
    %40 = arith.mulf %39, %36 : vector<16x128xf32>
    %41 = arith.truncf %40 : vector<16x128xf32> to vector<16x128xbf16>
    %cst_24 = arith.constant dense<0.000000e+00> : vector<16x128xf32>
    %42 = tpu.matmul %10, %41, %cst_24 {dimension_numbers = #tpu.dot_dimension_numbers<[1], [0], [0], [1], [0, 0, 1, 1], [], []>} : vector<16x16xbf16>, vector<16x128xbf16>, vector<16x128xf32> -> vector<16x128xf32>
    %43 = arith.truncf %42 : vector<16x128xf32> to vector<16x128xbf16>
    %cst_25 = arith.constant dense<0.000000e+00> : vector<16x128xf32>
    %44 = tpu.matmul %43, %37, %cst_25 {dimension_numbers = #tpu.dot_dimension_numbers<[1], [0], [0], [1], [0, 0, 1, 1], [], []>} : vector<16x128xbf16>, vector<128x128xbf16>, vector<16x128xf32> -> vector<16x128xf32>
    %45 = vector.broadcast %38 : vector<1x128xf32> to vector<16x128xf32>
    %46 = arith.addf %44, %45 : vector<16x128xf32>
    %c0_26 = arith.constant 0 : index
    %c0_27 = arith.constant 0 : index
    %c0_28 = arith.constant 0 : index
    %47 = vector.load %arg9[%c0_26, %c0_27, %c0_28] : memref<1x16x128xf32, #tpu.memory_space<vmem>>, vector<1x16x128xf32>
    %48 = vector.shape_cast %47 : vector<1x16x128xf32> to vector<16x128xf32>
    %49 = vector.shape_cast %46 : vector<16x128xf32> to vector<1x16x128xf32>
    tpu.vector_store %arg9[%c0_26, %c0_27, %c0_28], %49 {strides = array<i32>} : memref<1x16x128xf32, #tpu.memory_space<vmem>>, vector<1x16x128xf32>,
    return
  }
  func.func @transform_0(%arg0: i32) -> (i32, i32, i32) {
    %c0_i32 = arith.constant 0 : i32
    %c0_i32_0 = arith.constant 0 : i32
    %c0_i32_1 = arith.constant 0 : i32
    return %arg0, %c0_i32, %c0_i32_0 : i32, i32, i32
  }
  func.func @transform_1(%arg0: i32) -> (i32, i32, i32) {
    %c0_i32 = arith.constant 0 : i32
    %c0_i32_0 = arith.constant 0 : i32
    %c0_i32_1 = arith.constant 0 : i32
    return %arg0, %c0_i32, %c0_i32_0 : i32, i32, i32
  }
  func.func @transform_2(%arg0: i32) -> (i32, i32) {
    %c0_i32 = arith.constant 0 : i32
    %c0_i32_0 = arith.constant 0 : i32
    %c0_i32_1 = arith.constant 0 : i32
    return %c0_i32, %c0_i32_0 : i32, i32
  }
  func.func @transform_3(%arg0: i32) -> (i32, i32) {
    %c0_i32 = arith.constant 0 : i32
    %c0_i32_0 = arith.constant 0 : i32
    %c0_i32_1 = arith.constant 0 : i32
    return %c0_i32, %c0_i32_0 : i32, i32
  }
  func.func @transform_4(%arg0: i32) -> (i32, i32) {
    %c0_i32 = arith.constant 0 : i32
    %c0_i32_0 = arith.constant 0 : i32
    %c0_i32_1 = arith.constant 0 : i32
    return %c0_i32, %c0_i32_0 : i32, i32
  }
  func.func @transform_5(%arg0: i32) -> (i32, i32) {
    %c0_i32 = arith.constant 0 : i32
    %c0_i32_0 = arith.constant 0 : i32
    %c0_i32_1 = arith.constant 0 : i32
    return %c0_i32, %c0_i32_0 : i32, i32
  }
  func.func @transform_6(%arg0: i32) -> (i32, i32) {
    %c0_i32 = arith.constant 0 : i32
    %c0_i32_0 = arith.constant 0 : i32
    %c0_i32_1 = arith.constant 0 : i32
    return %c0_i32, %c0_i32_0 : i32, i32
  }
  func.func @transform_7(%arg0: i32) -> (i32, i32) {
    %c0_i32 = arith.constant 0 : i32
    %c0_i32_0 = arith.constant 0 : i32
    %c0_i32_1 = arith.constant 0 : i32
    return %c0_i32, %c0_i32_0 : i32, i32
  }
  func.func @transform_8(%arg0: i32) -> (i32, i32, i32) {
    %c0_i32 = arith.constant 0 : i32
    %c0_i32_0 = arith.constant 0 : i32
    %c0_i32_1 = arith.constant 0 : i32
    return %arg0, %c0_i32, %c0_i32_0 : i32, i32, i32
  }
}

</mosaic_0001>

<bundles_post_ra>
// kernel: tpu_custom_call.1
= control target key start
LH: loop header
LB: loop body
LE: loop exit
PB: predicated region body
PF: predicated region fallthrough
CT: control target
= control target key end

     0   :  { %13 = vsyncpa [#allocation3], 0  ;;  %s1622_s0 = inlined_call_operand.hbm [shape: bf16[2,16,16], index: 0, kind: input, shape index: {}]   ;;  %s1623_s1 = inlined_call_operand.vmem [shape: f32[2,16,8], index: 1, kind: input, shape index: {}]   ;;  %s1624_s2 = inlined_call_operand.vmem [shape: bf16[8,128], index: 2, kind: input, shape index: {}]   ;;  %s1625_s3 = inlined_call_operand.vmem [shape: f32[1,128], index: 3, kind: input, shape index: {}]   ;;  %s1626_s4 = inlined_call_operand.hbm [shape: bf16[128,128], index: 4, kind: input, shape index: {}]   ;;  %s1627_s5 = inlined_call_operand.vmem [shape: f32[1,128], index: 5, kind: input, shape index: {}]   ;;  %s1628_s6 = inlined_call_operand.vmem [shape: bf16[128,128], index: 6, kind: input, shape index: {}]   ;;  %s1629_s7 = inlined_call_operand.vmem [shape: f32[1,128], index: 7, kind: input, shape index: {}]   ;;  %s1630_s8 = inlined_call_operand.hbm [shape: f32[2,16,128], index: 8, kind: output, shape index: {}]  }
   0x1   :  { %15 = vsyncpa [#allocation3 + $0x1], 0 }
   0x2   :  { %16 = vsyncpa [#allocation6], 0 }
   0x3   :  { %17 = vsyncpa [#allocation4], 0 }
   0x4   :  { %19 = vsyncpa [#allocation4 + $0x1], 0  ;;  %s1319_s27 = smov 0   ;;  %s1321_s28 = smov 0  }
   0x5   :  { %s1323_s29 = smov 0   ;;  %s1325_s30 = smov 0  }
   0x6 LB: > { %s1340_s9 = sadd.s32 4294967295, %s1263_s30   ;;  %s914_s10 = sadd.s32 4294967294, %s1263_s30   ;;  %s1263_s30 = sphi %s1325_s30, %s1652_s30   ;;  %s1259_s29 = sphi %s1323_s29, %s1655_s29   ;;  %s1255_s28 = sphi %s1321_s28, %s1654_s28   ;;  %s1251_s27 = sphi %s1319_s27, %s1653_s27  }
   0x7   : > { %p45_p0 = scmp.ne.s32.totalorder %s1255_s28, %s1251_s27  ;;  %p1631_p1 = scmp.eq.s32.totalorder %s1340_s9, 0 }
   0x8   : > { %p227_p3 = scmp.eq.s32.totalorder %s914_s10, 1  ;;  %p915_p5 = scmp.ge.s32.totalorder %s1263_s30, 1 }
   0x9   : > { %p1349_p4 = por %p1631_p1, %p45_p0  ;;  %p234_p7 = scmp.lt.s32.totalorder %s1263_s30, 3 }
   0xa   : > { %p1354_p6 = por %p227_p3, %p45_p0  ;;  %s1265_s14 = smov [#allocation5]  }
   0xb   : > { %s1637_s11 = scalar_select %p1349_p4, 1, 0 }
   0xc   : > { %s1638_s12 = scalar_select %p1354_p6, 1, 0 }
   0xd   : > { %p1359_p8 = pnand %p915_p5, %p234_p7  ;;  %s252_s15 = sshll.u32 %s1265_s14, 4  ;;  %s1363_s15 = int_to_ptr.vmem [resolvable:$true] %s252_s15 }
   0xe   : > { %s1375_s17 = sadd.s32 1, %s1263_s30   ;;  %s32_s18 = sadd.s32 1, %s1259_s29 }
   0xf   : > { %s1639_s13 = scalar_select %p1359_p8, 1, 0 }
  0x10   : > { %p1060_p9 = pneg %p1359_p8  ;;  %1641 = sst [smem:[#allocation11_spill]] %s1375_s17 }
  0x11   : > { %s29_s19 = ssub.s32 %s1263_s30, %s1375_s17  ;;  %s1135_s22 = scalar_lea.hbm %s1626_s4, 1024 }
  0x12   : > { %p1370_p11 = pnand %p1060_p9, %p1631_p1  ;;  %p1136_p12 = scmp.ne.s32.totalorder %s1626_s4, %s1135_s22 }
  0x13   : > { %p1142_p5 = scmp.lt.u32.totalorder %s1135_s22, %s1626_s4 }
  0x14   : > { %p1137_p13 = pneg %p1370_p11 }
  0x16   : > { %p1138_p0 = pnand %p1137_p13, %p1136_p12 }
  0x18   : > { %p1139_p3 = pneg %p1138_p0 }
  0x1a   : > { %p1144_p7 = pnand %p1142_p5, %p1139_p3 }
  0x1c   : > { %1147 = shalt.err (!%p1144_p7)
}
  0x1d   : > { %s1148_s10 = scalar_lea.vmem %s1363_s15, 1024  ;;  %p1156_p2 = scmp.lt.s32.totalorder %s1363_s15, %s1363_s15 }
  0x1e   : > { %p1149_p9 = scmp.ne.s32.totalorder %s1363_s15, %s1148_s10  ;;  %p1157_p6 = scmp.lt.s32.totalorder %s1148_s10, %s1148_s10 }
  0x20   : > { %p1151_p10 = pnand %p1149_p9, %p1137_p13  ;;  %p1158_p4 = por %p1157_p6, %p1156_p2 }
  0x22   : > { %p1152_p1 = pneg %p1151_p10 }
  0x24   : > { %p1159_p8 = pnand %p1158_p4, %p1152_p1 }
  0x26   : > { %1162 = shalt.err (!%p1159_p8)
}
  0x27   : > { %s1636_s14 = smov 64   ;;  %s1267_s20 = smov 4  }
  0x28   : > { %1063 = dma.hbm_to_vmem [thread:$0]  (!%p1370_p11), %s1626_s4, 1024, %s1363_s15, [#allocation6], %s1636_s14, %s1636_s14, %s1267_s20  }
  0x29   : > { %p30_p1 = scmp.eq.s32.totalorder %s29_s19, 0  ;;  %p39_p2 = scmp.ne.s32.totalorder %s1259_s29, %s1255_s28 }
  0x2a   : > { %p40_p4 = scmp.eq.s32.totalorder %s1263_s30, 0  ;;  %p1073_p6 = scmp.lt.s32.totalorder %s1263_s30, 2 }
  0x2b   : > { %s1409_s23 = scalar_select %p30_p1, %s1259_s29, %s32_s18  }
  0x2c   : > { %p41_p8 = por %p40_p4, %p39_p2  ;;  %p1642_p10 = scmp.eq.s32.totalorder %s1340_s9, 1 }
  0x2d   : > { %s275_s16 = sand.u32 1, %s1259_s29   ;;  %s955_s25 = sshll.u32 %s1263_s30, 7 }
  0x2e   : > { %p1413_p12 = por %p1642_p10, %p39_p2  ;;  %s918_s26 = sshll.u32 %s275_s16, 3 }
  0x2f   : > { %s1422_s21 = scalar_lea.hbm %s1622_s0, %s955_s25  ;;  %s279_s15 = scalar_lea.vmem [#allocation2], %s918_s26 }
  0x30   : > { %s286_s18 = sshll.u32 %s279_s15, 4  ;;  %p1424_p11 = pnand %p1073_p6, %p41_p8  ;;  %s1428_s18 = int_to_ptr.vmem [resolvable:$true] %s286_s18 }
  0x31   : > { %s1430_s22 = scalar_lea.sflag [#allocation3], %s275_s16  ;;  %s1163_s14 = scalar_lea.hbm %s1422_s21, 128 }
  0x32   : > { %p1164_p13 = scmp.ne.s32.totalorder %s1422_s21, %s1163_s14  ;;  %p1165_p0 = pneg %p1424_p11 }
  0x33   : > { %s1168_s26 = scalar_lea.hbm %s1622_s0, 256  ;;  %p1169_p7 = scmp.lt.u32.totalorder %s1422_s21, %s1622_s0 }
  0x34   : > { %p1166_p3 = pnand %p1165_p0, %p1164_p13  ;;  %p1170_p9 = scmp.lt.u32.totalorder %s1168_s26, %s1163_s14 }
  0x35   : > { %p1172_p2 = scmp.lt.u32.totalorder %s1163_s14, %s1422_s21 }
  0x36   : > { %p1167_p5 = pneg %p1166_p3  ;;  %p1171_p1 = por %p1170_p9, %p1169_p7 }
  0x38   : > { %p1173_p4 = por %p1172_p2, %p1171_p1 }
  0x3a   : > { %p1174_p6 = pnand %p1173_p4, %p1167_p5 }
  0x3c   : > { %1177 = shalt.err (!%p1174_p6)
}
  0x3d   : > { %s1178_s16 = scalar_lea.vmem %s1428_s18, 128  ;;  %s1268_s17 = smov [#allocation2]  }
  0x3e   : > { %p1179_p8 = scmp.ne.s32.totalorder %s1428_s18, %s1178_s16  ;;  %s1183_s25 = sshll.u32 %s1268_s17, 4  ;;  %s1184_s25 = int_to_ptr.vmem [resolvable:$false] %s1183_s25 }
  0x3f   : > { %s1185_s10 = scalar_lea.vmem %s1184_s25, 256  ;;  %p1186_p3 = scmp.lt.s32.totalorder %s1428_s18, %s1184_s25 }
  0x40   : > { %p1181_p10 = pnand %p1179_p8, %p1165_p0  ;;  %p1187_p7 = scmp.lt.s32.totalorder %s1185_s10, %s1178_s16 }
  0x42   : > { %p1182_p13 = pneg %p1181_p10  ;;  %p1188_p9 = por %p1187_p7, %p1186_p3 }
  0x44   : > { %p1189_p1 = pnand %p1188_p9, %p1182_p13 }
  0x46   : > { %1192 = shalt.err (!%p1189_p1)
}
  0x47   : > { %s1645_s14 = smov 64   ;;  %p1646_p0 = scmp.ne.s32.totalorder %s1639_s13, 0 }
  0x48   : > { %1067 = dma.hbm_to_vmem [thread:$0]  (!%p1424_p11), %s1422_s21, 128, %s1428_s18, %s1430_s22, %s1645_s14, %s1645_s14, %s1267_s20  }
  0x49   : > { %306 = sbr.rel (%p1646_p0) target bundleno = 1583 (0x62f), region = 52  ;;  %s1464_s26 = sand.u32 (!%p1646_p0), 1, %s1255_s28  }
  0x4a   : > { %s922_s15 = sshll.u32 (!%p1646_p0), %s1464_s26, 3  ;;  %s309_s16 = scalar_lea.sflag (!%p1646_p0), [#allocation3], %s1464_s26 }
  0x4b   : > { %s312_s17 = scalar_lea.vmem (!%p1646_p0), [#allocation2], %s922_s15  ;;  %p1647_p5 = scmp.ne.s32.totalorder (!%p1646_p0), %s1637_s11, 0 }
  0x50   : > { %1238 = dma.done.wait (%p1647_p5), %s309_s16, 128  }
  0x51   : > { %1240 = vsyncadd (%p1647_p5), %s309_s16, 4294967168  ;;  %p1648_p2 = scmp.eq.s32.totalorder %s1340_s9, 0 }
  0x53   : > { %1242 = dma.done.wait (%p1648_p2), [#allocation6], 1024   ;;  %p1649_p11 = pmov %p1648_p2 }
  0x54   : > { %v959_v0 = vld [vmem:[%s312_s17] sm:$0xff]   ;;  %vm364_vm0 = vcmask 130048   ;;  %v1269_v5 = vmov 0.0   ;;  %vm1270_vm1 = vmmov 0   ;;  %p354_p4 = scmp.lt.s32.totalorder %s1340_s9, 1  ;;  %vm440_vm2 = vcmask 1043456  }
  0x55   : > { %1244 = vsyncadd (%p1649_p11), [#allocation6], 4294966272  ;;  %v960_v1 = vunpack.c.l.bf16 %v959_v0  ;;  %v961_v2 = vunpack.c.h.bf16 %v959_v0  ;;  %988 = vmatprep.subr.bf16.mxu1 %v1269_v5  ;;  %1000 = vmatprep.subr.bf16.mxu0 %v1269_v5  ;;  %v380_v20 = vld [vmem:[%s1624_s2] sm:$0xf]  ;;  %vm436_vm3 = vcmask 64512   ;;  %v1115_v27 = vld [vmem:[#allocation5] sm:$0xff]  }
  0x56   : > { %990 = vmatprep.mubr.msk.bf16.mxu1 %vm1270_vm1, %v1269_v5  ;;  %1002 = vmatprep.mubr.msk.bf16.mxu0 %vm1270_vm1, %v1269_v5  ;;  %s355_s11 = scalar_select %p354_p4, %s1340_s9, 1  ;;  %v442_v21 = vsel %vm440_vm2, %v380_v20, 0  ;;  %v1116_v28 = vld [vmem:[#allocation5 + $0x8] sm:$0xff]   ;;  %v1117_v29 = vld [vmem:[#allocation5 + $0x10] sm:$0xff]   ;;  %v1118_v30 = vld [vmem:[#allocation5 + $0x18] sm:$0xff]  }
  0x57   : > { %v365_v3 = vsel %vm364_vm0, %v960_v1, 0.0  ;;  %v368_v4 = vsel %vm364_vm0, %v961_v2, 0.0  ;;  %v1119_v31 = vld [vmem:[#allocation5 + $0x20] sm:$0xff]   ;;  %v1120_v32 = vld [vmem:[#allocation5 + $0x28] sm:$0xff]   ;;  %v1121_v33 = vld [vmem:[#allocation5 + $0x30] sm:$0xff]   ;;  %s957_s22 = sshll.u32 %s1340_s9, 8 }
  0x58   : > { %366 = vadd.xlane.f32.xlu0 %v365_v3  ;;  %s956_s13 = sshll.u32 %s355_s11, 4  ;;  %v928_v34 = vld [vmem:[%s1625_s3] ss:$0 sm:$0xff]  ;;  %v1122_v46 = vld [vmem:[#allocation5 + $0x38] sm:$0xff]   ;;  %v1126_v3 = vld [vmem:[%s1628_s6 + $0x18] sm:$0xff]   ;;  %s1578_s14 = scalar_lea.hbm %s1630_s8, %s957_s22 }
  0x59   : > { %s358_s18 = scalar_lea.vmem %s1623_s1, %s956_s13  ;;  %v931_v52 = vld [vmem:[%s1627_s5] ss:$0 sm:$0xff]  ;;  %s924_s13 = sshll.u32 %s1464_s26, 4 }
  0x5a   : > { %v378_v11 = vld [vmem:[%s358_s18] sm:$0xff]  ;;  %v379_v12 = vld [vmem:[%s358_s18 + $0x8] sm:$0xff]  ;;  %s353_s18 = scalar_lea.vmem [#allocation7], %s924_s13  ;;  %s806_s15 = scalar_lea.sflag [#allocation4], %s1464_s26 }
  0x5b   : > { %v1123_v0 = vld [vmem:[%s1628_s6] sm:$0xff]   ;;  %s819_s19 = sshll.u32 %s353_s18, 4  ;;  %s1271_s16 = smov [#allocation7]   ;;  %s1573_s19 = int_to_ptr.vmem [resolvable:$true] %s819_s19 }
  0x5c   : > { %369 = vadd.xlane.f32.xlu0 %v368_v4  ;;  %v1127_v4 = vld [vmem:[%s1628_s6 + $0x20] sm:$0xff]   ;;  %s1193_s9 = scalar_lea.vmem %s1573_s19, 256  ;;  %s1197_s17 = sshll.u32 %s1271_s16, 4  ;;  %s1198_s17 = int_to_ptr.vmem [resolvable:$false] %s1197_s17 }
  0x5d   : > { %p1194_p6 = scmp.ne.s32.totalorder %s1573_s19, %s1193_s9  ;;  %s1199_s11 = scalar_lea.vmem %s1198_s17, 512 }
  0x5e   : > { %p1200_p13 = scmp.lt.s32.totalorder %s1573_s19, %s1198_s17  ;;  %p1201_p3 = scmp.lt.s32.totalorder %s1199_s11, %s1193_s9 }
  0x5f   : > { %p1195_p8 = pnand %p1194_p6, %p1413_p12 }
  0x60   : > { %p1202_p7 = por %p1201_p3, %p1200_p13 }
  0x61   : > { %p1196_p10 = pneg %p1195_p8 }
  0x63   : > { %p1203_p9 = pnand %p1202_p7, %p1196_p10 }
  0xe5   : > { %v367_v6 = vpop.xlane.xlu0 %366 }
  0xe6   : > { %v371_v7 = vadd.f32 1e-06, %v367_v6  ;;  %v1128_v6 = vld [vmem:[%s1628_s6 + $0x28] sm:$0xff]  }
  0xe8   : > { %1131 = vrsqrt.f32 %v371_v7  ;;  %v1129_v7 = vld [vmem:[%s1628_s6 + $0x30] sm:$0xff]  }
  0xe9   : > { %v370_v8 = vpop.xlane.xlu0 %369 }
  0xea   : > { %v372_v9 = vadd.f32 1e-06, %v370_v8  ;;  %v1130_v8 = vld [vmem:[%s1628_s6 + $0x38] sm:$0xff]  }
  0xec   : > { %1133 = vrsqrt.f32 %v372_v9 }
  0xf2   : > { %v1489_v10 = vpop.eup %1131 }
  0xf3   : > { %v382_v14 = vmul.f32 %v1489_v10, %v378_v11  ;;  %v375_v18 = vmul.f32 %v1489_v10, %v960_v1  ;;  %v1124_v1 = vld [vmem:[%s1628_s6 + $0x8] sm:$0xff]  }
  0xf6   : > { %v1491_v13 = vpop.eup %1133 }
  0xf7   : > { %v383_v15 = vmul.f32 %v1491_v13, %v379_v12  ;;  %v376_v16 = vmul.f32 %v1491_v13, %v961_v2  ;;  %v1125_v2 = vld [vmem:[%s1628_s6 + $0x10] sm:$0xff]  }
  0xf9   : > { %v384_v17 = vpack.c.bf16 %v383_v15, %v382_v14  ;;  %v1497_v19 = vpack.c.bf16 %v376_v16, %v375_v18  ;;  %v941_v14 = vld [vmem:[%s1629_s7] ss:$0 sm:$0xff] }
  0xfb   : > { %989 = vmatpush3.bf16.msra.mxu1 %v384_v17 }
  0xfc   : > { %994 = vmatprep.subr.bf16.mxu1 %v1269_v5 }
  0xfe   : > { %991 = vmatmul.mubr.msk.bf16.vlgmr.msra.gmra.mrb[0].mxu1 %vm364_vm0, %v1497_v19 }
  0xff   : > { %996 = vmatprep.mubr.msk.bf16.mxu1 %vm1270_vm1, %v1269_v5  ;;  %995 = vmatpush3.bf16.msra.mxu1 %v442_v21 }
 0x100   : > { %1006 = vmatprep.subr.bf16.mxu1 %v1269_v5 }
 0x1d1   : > { %v422_v22 = vpop.f32.mrb[0].mxu1 }
 0x1d2   : > { %v992_v23 = vpop.f32.mrb[1].mxu1 }
 0x1d3   : > { %v425_v24 = vpop.f32.mrb[2].mxu1 }
 0x1d4   : > { %v429_v25 = vpack.c.bf16 %v425_v24, %v422_v22  ;;  %v993_v26 = vpop.f32.mrb[3].mxu1 }
 0x1d6   : > { %997 = vmatmul.mubr.msk.bf16.vlgmr.msra.gmra.mrb[4].mxu1 %vm436_vm3, %v429_v25 }
 0x1d7   : > { %1022 = vmatprep.mubr.msk.bf16.mxu1 %vm1270_vm1, %v1269_v5  ;;  %1007 = vmatpush3.bf16.msra.mxu1 %v1115_v27 }
 0x1d8   : > { %1008 = vmatprep.subr.bf16.mxu1 %v1269_v5 }
 0x1db   : > { %1009 = vmatpush3.bf16.msra.mxu1 %v1116_v28 }
 0x1dc   : > { %1010 = vmatprep.subr.bf16.mxu1 %v1269_v5 }
 0x1df   : > { %1011 = vmatpush3.bf16.msra.mxu1 %v1117_v29 }
 0x1e0   : > { %1012 = vmatprep.subr.bf16.mxu1 %v1269_v5 }
 0x1e3   : > { %1013 = vmatpush3.bf16.msra.mxu1 %v1118_v30 }
 0x1e4   : > { %1014 = vmatprep.subr.bf16.mxu1 %v1269_v5 }
 0x1e7   : > { %1015 = vmatpush3.bf16.msra.mxu1 %v1119_v31 }
 0x1e8   : > { %1016 = vmatprep.subr.bf16.mxu1 %v1269_v5 }
 0x1eb   : > { %1017 = vmatpush3.bf16.msra.mxu1 %v1120_v32 }
 0x1ec   : > { %1018 = vmatprep.subr.bf16.mxu1 %v1269_v5 }
 0x1ef   : > { %1019 = vmatpush3.bf16.msra.mxu1 %v1121_v33 }
 0x1f0   : > { %1020 = vmatprep.subr.bf16.mxu1 %v1269_v5 }
 0x1f3   : > { %1021 = vmatpush3.bf16.msra.mxu1 %v1122_v46 }
 0x2a9   : > { %v478_v35 = vpop.f32.mrb[4].mxu1 }
 0x2aa   : > { %v479_v36 = vadd.f32 %v928_v34, %v478_v35  ;;  %v998_v37 = vpop.f32.mrb[5].mxu1 }
 0x2ab   : > { %v481_v38 = vpop.f32.mrb[6].mxu1 }
 0x2ac   : > { %v485_v39 = vmax.f32 %v479_v36, 0.0  ;;  %v482_v40 = vadd.f32 %v928_v34, %v481_v38  ;;  %v999_v41 = vpop.f32.mrb[7].mxu1 }
 0x2ae   : > { %v486_v42 = vmax.f32 %v482_v40, 0.0  ;;  %v504_v43 = vmul.f32 %v1489_v10, %v485_v39 }
 0x2b0   : > { %v505_v44 = vmul.f32 %v1491_v13, %v486_v42 }
 0x2b2   : > { %v506_v45 = vpack.c.bf16 %v505_v44, %v504_v43 }
 0x2b4   : > { %1001 = vmatpush3.bf16.msra.mxu0 %v506_v45 }
 0x2b5   : > { %1026 = vmatprep.subr.bf16.mxu0 %v1269_v5 }
 0x2b7   : > { %1003 = vmatmul.mubr.msk.bf16.vlgmr.msra.gmra.mrb[0].mxu0 %vm364_vm0, %v1497_v19 }
 0x2b8   : > { %1028 = vmatprep.mubr.msk.bf16.mxu0 %vm1270_vm1, %v1269_v5 }
 0x38a   : > { %v541_v47 = vpop.f32.mrb[0].mxu0 }
 0x38b   : > { %v1004_v48 = vpop.f32.mrb[1].mxu0 }
 0x38c   : > { %v544_v49 = vpop.f32.mrb[2].mxu0 }
 0x38d   : > { %v548_v50 = vpack.c.bf16 %v544_v49, %v541_v47  ;;  %v1005_v51 = vpop.f32.mrb[3].mxu0 }
 0x38f   : > { %1023 = vmatmul.mubr.bf16.vlgmr.msra.gmra.mrb[8].mxu1 %v548_v50 }
 0x462   : > { %v637_v53 = vpop.f32.mrb[8].mxu1 }
 0x463   : > { %v638_v54 = vadd.f32 %v931_v52, %v637_v53  ;;  %v1024_v55 = vpop.f32.mrb[9].mxu1 }
 0x464   : > { %v640_v56 = vpop.f32.mrb[10].mxu1 }
 0x465   : > { %v644_v57 = vmax.f32 %v638_v54, 0.0  ;;  %v641_v58 = vadd.f32 %v931_v52, %v640_v56  ;;  %v1025_v59 = vpop.f32.mrb[11].mxu1 }
 0x467   : > { %v645_v60 = vmax.f32 %v641_v58, 0.0  ;;  %v663_v61 = vmul.f32 %v1489_v10, %v644_v57 }
 0x469   : > { %v664_v62 = vmul.f32 %v1491_v13, %v645_v60 }
 0x46b   : > { %v665_v63 = vpack.c.bf16 %v664_v62, %v663_v61 }
 0x46d   : > { %1027 = vmatpush3.bf16.msra.mxu0 %v665_v63 }
 0x46e   : > { %1032 = vmatprep.subr.bf16.mxu0 %v1269_v5 }
 0x470   : > { %1029 = vmatmul.mubr.msk.bf16.vlgmr.msra.gmra.mrb[4].mxu0 %vm364_vm0, %v1497_v19 }
 0x471   : > { %1033 = vmatpush3.bf16.msra.mxu0 %v1123_v0  ;;  %1048 = vmatprep.mubr.msk.bf16.mxu0 %vm1270_vm1, %v1269_v5 }
 0x472   : > { %1034 = vmatprep.subr.bf16.mxu0 %v1269_v5 }
 0x475   : > { %1035 = vmatpush3.bf16.msra.mxu0 %v1124_v1 }
 0x476   : > { %1036 = vmatprep.subr.bf16.mxu0 %v1269_v5 }
 0x479   : > { %1037 = vmatpush3.bf16.msra.mxu0 %v1125_v2 }
 0x47a   : > { %1038 = vmatprep.subr.bf16.mxu0 %v1269_v5 }
 0x47d   : > { %1039 = vmatpush3.bf16.msra.mxu0 %v1126_v3 }
 0x47e   : > { %1040 = vmatprep.subr.bf16.mxu0 %v1269_v5 }
 0x481   : > { %1041 = vmatpush3.bf16.msra.mxu0 %v1127_v4 }
 0x482   : > { %1042 = vmatprep.subr.bf16.mxu0 %v1269_v5 }
 0x485   : > { %1043 = vmatpush3.bf16.msra.mxu0 %v1128_v6 }
 0x486   : > { %1044 = vmatprep.subr.bf16.mxu0 %v1269_v5 }
 0x489   : > { %1045 = vmatpush3.bf16.msra.mxu0 %v1129_v7 }
 0x48a   : > { %1046 = vmatprep.subr.bf16.mxu0 %v1269_v5 }
 0x48d   : > { %1047 = vmatpush3.bf16.msra.mxu0 %v1130_v8 }
 0x543   : > { %v700_v9 = vpop.f32.mrb[4].mxu0 }
 0x544   : > { %v1030_v10 = vpop.f32.mrb[5].mxu0 }
 0x545   : > { %v703_v11 = vpop.f32.mrb[6].mxu0 }
 0x546   : > { %v707_v12 = vpack.c.bf16 %v703_v11, %v700_v9  ;;  %v1031_v13 = vpop.f32.mrb[7].mxu0 }
 0x548   : > { %1049 = vmatmul.mubr.bf16.vlgmr.msra.gmra.mrb[8].mxu0 %v707_v12 }
 0x61b   : > { %v796_v5 = vpop.f32.mrb[8].mxu0 }
 0x61c   : > { %v797_v15 = vadd.f32 %v941_v14, %v796_v5  ;;  %v1050_v16 = vpop.f32.mrb[9].mxu0 }
 0x61d   : > { %v799_v17 = vpop.f32.mrb[10].mxu0 }
 0x61e   : > { %803 = vst [vmem:[%s353_s18] sm:$0xff] %v797_v15  ;;  %v800_v18 = vadd.f32 %v941_v14, %v799_v17  ;;  %v1051_v19 = vpop.f32.mrb[11].mxu0 }
 0x620   : > { %804 = vst [vmem:[%s353_s18 + $0x8] sm:$0xff] %v800_v18 }
 0x621   : > { %1206 = shalt.err (!%p1203_p9)
}
 0x622   : > { %s1207_s13 = scalar_lea.hbm %s1578_s14, 256  ;;  %s1211_s18 = scalar_lea.hbm %s1630_s8, 512 }
 0x623   : > { %p1208_p1 = scmp.ne.s32.totalorder %s1578_s14, %s1207_s13  ;;  %p1212_p2 = scmp.lt.u32.totalorder %s1578_s14, %s1630_s8 }
 0x624   : > { %p1213_p11 = scmp.lt.u32.totalorder %s1211_s18, %s1207_s13  ;;  %p1215_p6 = scmp.lt.u32.totalorder %s1207_s13, %s1578_s14 }
 0x625   : > { %p1209_p0 = pnand %p1208_p1, %p1413_p12 }
 0x626   : > { %p1214_p4 = por %p1213_p11, %p1212_p2 }
 0x627   : > { %p1210_p5 = pneg %p1209_p0 }
 0x628   : > { %p1216_p8 = por %p1215_p6, %p1214_p4 }
 0x62a   : > { %p1217_p10 = pnand %p1216_p8, %p1210_p5 }
 0x62c   : > { %1220 = shalt.err (!%p1217_p10)
}
 0x62d   : > { %s1272_s10 = smov 128   ;;  %s1273_s9 = smov 8  }
 0x62e   : > { %1058 = dma.vmem_to_hbm [thread:$0]  (%p1413_p12), %s1573_s19, 256, %s1578_s14, %s806_s15, %s1272_s10, %s1272_s10, %s1273_s9  }
 0x62f PF: > { %s834_s16 = sand.u32 1, %s1251_s27   ;;  %p1650_p13 = scmp.ne.s32.totalorder %s1638_s12, 0 }
 0x630   : > { %p1651_p3 = scmp.ge.s32.totalorder %s1263_s30, 2  ;;  %s835_s17 = scalar_lea.sflag [#allocation4], %s834_s16 }
 0x632   : > { %p1069_p7 = pnand %p1651_p3, %p1650_p13 }
 0x634   : > { %1246 = dma.done.wait (!%p1069_p7), %s835_s17, 256  }
 0x635   : > { %1248 = vsyncadd (!%p1069_p7), %s835_s17, 4294967040  ;;  %s1652_s30 = sld [smem:[#allocation11_spill]]  ;;  %s1653_s27 = smov %s1255_s28 }
 0x636   : > { %s1654_s28 = smov %s1259_s29  ;;  %s1655_s29 = smov %s1409_s23 }
 0x63b   : > { %p22_p9 = scmp.ge.s32.totalorder %s1652_s30, 4  }
 0x63d   :  { %24 = sbr.rel (!%p22_p9) target bundleno = 6 (0x6), region = 104 }
 0x644   :  { %840 = vsyncpa [#allocation3], 1 }
 0x645   :  { %842 = vsyncpa [#allocation3 + $0x1], 1 }
 0x646   :  { %843 = vsyncpa [#allocation6], 1 }
 0x647   :  { %844 = vsyncpa [#allocation4], 1 }
 0x648   :  { %846 = vsyncpa [#allocation4 + $0x1], 1 }

</bundles_post_ra>
